<compile_context>
chip_gen: v5e
topology: v5e:2x2
jax: 0.10.0
libtpu: 0.0.40
codegen_flags: <defaults>
</compile_context>

<pallas_src>
import jax
import jax.numpy as jnp
from jax.experimental import pallas as pl
from jax.experimental.pallas import tpu as pltpu

IN_FEATURES = 16
H1, H2 = 100, 200
NUM_ACTIONS = 4
LANE = 128            # TPU lane width
A_OFF = LANE // 2     # A head packed at lanes [64, 68)
BATCH_TILE = 1024     # batch (M) tile for the gridded path


def _dddqn_kernel(x_ref, w1_ref, b1_ref, w2_ref, b2_ref, wh_ref, bh_ref, q_ref):
    # stack_first_few_layers: Linear(16,100)+ReLU, Linear(100,200)+ReLU.
    # x_ref is (Bt, 16) bf16; weights are zero-padded to lane/sublane tiles,
    # so the padded columns/rows contribute exact zeros.
    h1 = jnp.dot(x_ref[...], w1_ref[...],
                 preferred_element_type=jnp.float32) + b1_ref[...]
    h1 = jnp.maximum(h1, 0.0)
    h2 = jnp.dot(h1.astype(jnp.bfloat16), w2_ref[...],
                 preferred_element_type=jnp.float32) + b2_ref[...]
    h2 = jnp.maximum(h2, 0.0)

    # Fused V/A heads: one matmul; V in lanes [0,4), A in lanes [64,68).
    head = jnp.dot(h2.astype(jnp.bfloat16), wh_ref[...],
                   preferred_element_type=jnp.float32) + bh_ref[...]
    head = jnp.maximum(head, 0.0)                            # (Bt, 128) f32

    # Per-row mean over the 4 real action lanes only (padded lanes excluded).
    # Lane reduction runs on the XLU, mask on the VALU: free filler while the
    # kernel is DMA/MXU/overhead-bound.
    lane = jax.lax.broadcasted_iota(jnp.int32, head.shape, 1)
    a_mask = jnp.logical_and(lane >= A_OFF, lane < A_OFF + NUM_ACTIONS)
    a_mean = jnp.sum(jnp.where(a_mask, head, 0.0), axis=-1,
                     keepdims=True) * (1.0 / NUM_ACTIONS)    # (Bt, 1)

    # Align A (lanes 64:68) onto V (lanes 0:4).  A 64-lane circular roll is the
    # same in either rotation direction, so the result is convention-safe.
    a_on_v = pltpu.roll(head, shift=A_OFF, axis=1)

    # Q = ReLU(V + (A - mean(A))); only lanes [0,4) are meaningful.
    # Combine in f32, cast to bf16 on the store (halves HBM output traffic).
    q_ref[...] = jnp.maximum(head + a_on_v - a_mean, 0.0).astype(q_ref.dtype)


def _vmem_spec():
    return pl.BlockSpec(memory_space=pltpu.MemorySpace.VMEM)


def _call_gridless(x_pad, packed):
    b_pad = x_pad.shape[0]
    return pl.pallas_call(
        _dddqn_kernel,
        out_shape=jax.ShapeDtypeStruct((b_pad, LANE), jnp.bfloat16),
        in_specs=[_vmem_spec() for _ in range(1 + len(packed))],
        out_specs=_vmem_spec(),
    )(x_pad, *packed)


def _call_gridded(x_pad, packed):
    b_pad = x_pad.shape[0]
    n_tiles = b_pad // BATCH_TILE

    def full_spec(a):
        nd = a.ndim
        return pl.BlockSpec(a.shape, lambda i, _nd=nd: (0,) * _nd)

    return pl.pallas_call(
        _dddqn_kernel,
        out_shape=jax.ShapeDtypeStruct((b_pad, LANE), jnp.bfloat16),
        grid=(n_tiles,),
        # x block (BATCH_TILE, 16): last dim equals the full array dim -> legal.
        in_specs=[pl.BlockSpec((BATCH_TILE, IN_FEATURES), lambda i: (i, 0))]
                 + [full_spec(p) for p in packed],
        out_specs=pl.BlockSpec((BATCH_TILE, LANE), lambda i: (i, 0)),
        compiler_params=pltpu.CompilerParams(
            dimension_semantics=("parallel",)),  # v7x: tiles split across TCs
    )(x_pad, *packed)


def _round_up(n, m):
    return (n + m - 1) // m * m


@jax.jit
def dddqn_forward_batch(states, packed):
    """Batched forward: states (B, ...) where each state flattens to 16 feats.
    Returns (B, 4) float32 Q values."""
    b = states.shape[0]
    x = jnp.reshape(states, (b, -1)).astype(jnp.float32)
    assert x.shape[1] == IN_FEATURES, x.shape
    x = x.astype(jnp.bfloat16)
    if b > BATCH_TILE:
        # Even number of batch tiles so both v7x TensorCores get work; the
        # (at most one) extra all-zero tile is sub-microsecond of wasted work.
        b_pad, call = _round_up(b, 2 * BATCH_TILE), _call_gridded
    else:
        b_pad, call = _round_up(b, 8), _call_gridless
    x_pad = jnp.pad(x, ((0, b_pad - b), (0, 0)))   # fuses under jit
    q_pad = call(x_pad, packed)
    return q_pad[:b, :NUM_ACTIONS].astype(jnp.float32)


def dddqn_forward(s, packed):
    """Single-state forward matching the PyTorch module: flatten -> Q of (4,)."""
    return dddqn_forward_batch(jnp.reshape(s, (1, -1)), packed)[0]


def init_params(key):
    """PyTorch-style uniform(-1/sqrt(fan_in), 1/sqrt(fan_in)) init.
    Weights stored as (in_features, out_features)."""
    def linear(k, fan_in, fan_out):
        kw, kb = jax.random.split(k)
        bound = 1.0 / (fan_in ** 0.5)
        w = jax.random.uniform(kw, (fan_in, fan_out), jnp.float32, -bound, bound)
        b = jax.random.uniform(kb, (fan_out,), jnp.float32, -bound, bound)
        return w, b

    k1, k2, k3, k4 = jax.random.split(key, 4)
    w1, b1 = linear(k1, IN_FEATURES, H1)
    w2, b2 = linear(k2, H1, H2)
    wv, bv = linear(k3, H2, NUM_ACTIONS)
    wa, ba = linear(k4, H2, NUM_ACTIONS)
    return (w1, b1, w2, b2, wv, bv, wa, ba)


def pack_params(params):
    """Pad weights to tile multiples, fuse the V/A heads into one weight
    (V at lanes 0:4, A at lanes 64:68), cast matmul operands to bf16.
    Call once per weight update and reuse across forward calls."""
    w1, b1, w2, b2, wv, bv, wa, ba = params
    bf16 = jnp.bfloat16
    w1p = jnp.zeros((IN_FEATURES, LANE), bf16).at[:, :H1].set(w1.astype(bf16))
    b1p = jnp.zeros((1, LANE), jnp.float32).at[0, :H1].set(b1)
    w2p = jnp.zeros((LANE, 2 * LANE), bf16).at[:H1, :H2].set(w2.astype(bf16))
    b2p = jnp.zeros((1, 2 * LANE), jnp.float32).at[0, :H2].set(b2)
    whp = (jnp.zeros((2 * LANE, LANE), bf16)
           .at[:H2, :NUM_ACTIONS].set(wv.astype(bf16))
           .at[:H2, A_OFF:A_OFF + NUM_ACTIONS].set(wa.astype(bf16)))
    bhp = (jnp.zeros((1, LANE), jnp.float32)
           .at[0, :NUM_ACTIONS].set(bv)
           .at[0, A_OFF:A_OFF + NUM_ACTIONS].set(ba))
    return (w1p, b1p, w2p, b2p, whp, bhp)


def reference_forward_batch(states, params):
    """Pure-JAX reference of the PyTorch forward at the same precision as the
    kernel (bf16 matmul operands, f32 accumulate, bf16 final store)."""
    w1, b1, w2, b2, wv, bv, wa, ba = params
    b = states.shape[0]
    x = jnp.reshape(states, (b, -1)).astype(jnp.float32)

    def mm(a, w):
        return jnp.dot(a.astype(jnp.bfloat16), w.astype(jnp.bfloat16),
                       preferred_element_type=jnp.float32)

    h = jax.nn.relu(mm(x, w1) + b1)
    h = jax.nn.relu(mm(h, w2) + b2)
    v = jax.nn.relu(mm(h, wv) + bv)
    a = jax.nn.relu(mm(h, wa) + ba)
    q = jax.nn.relu(v + (a - jnp.mean(a, axis=-1, keepdims=True)))
    return q.astype(jnp.bfloat16).astype(jnp.float32)


if __name__ == "__main__":
    root = jax.random.PRNGKey(0)
    k_params, k_single, k_small, k_large = jax.random.split(root, 4)

    params = init_params(k_params)
    packed = pack_params(params)   # pack once, reuse for every forward call

    # 1) Single state, exactly the PyTorch module's contract: flatten -> Q(4,)
    s = jax.random.normal(k_single, (4, 4), dtype=jnp.float32)
    q = dddqn_forward(s, packed)
    jax.block_until_ready(q)
    q_ref = reference_forward_batch(s[None], params)[0]
    assert q.shape == (NUM_ACTIONS,)
    assert jnp.allclose(q, q_ref, rtol=1e-2, atol=1e-2), (q, q_ref)

    # 2) Small batch -> gridless path (whole arrays resident in VMEM).
    B1 = 300
    sb = jax.random.normal(k_small, (B1, 4, 4), dtype=jnp.float32)
    qb = dddqn_forward_batch(sb, packed)
    jax.block_until_ready(qb)
    qb_ref = reference_forward_batch(sb, params)
    assert qb.shape == (B1, NUM_ACTIONS)
    assert jnp.allclose(qb, qb_ref, rtol=1e-2, atol=1e-2), \
        float(jnp.max(jnp.abs(qb - qb_ref)))

    # 3) Larger batch -> gridded path: pads to an even number of 1024-row
    #    tiles, "parallel" axis lets v7x's two TensorCores split the work.
    B2 = 1200
    sl = jax.random.normal(k_large, (B2, 4, 4), dtype=jnp.float32)
    ql = dddqn_forward_batch(sl, packed)
    jax.block_until_ready(ql)
    ql_ref = reference_forward_batch(sl, params)
    assert ql.shape == (B2, NUM_ACTIONS)
    assert jnp.allclose(ql, ql_ref, rtol=1e-2, atol=1e-2), \
        float(jnp.max(jnp.abs(ql - ql_ref)))

    print("KERNEL_OK")
</pallas_src>

<mosaic_0001>
module attributes {stable_mosaic.version = 11 : i64} {
  func.func @_dddqn_kernel(%arg0: memref<8x16xbf16, #tpu.memory_space<vmem>>, %arg1: memref<16x128xbf16, #tpu.memory_space<vmem>>, %arg2: memref<1x128xf32, #tpu.memory_space<vmem>>, %arg3: memref<128x256xbf16, #tpu.memory_space<vmem>>, %arg4: memref<1x256xf32, #tpu.memory_space<vmem>>, %arg5: memref<256x128xbf16, #tpu.memory_space<vmem>>, %arg6: memref<1x128xf32, #tpu.memory_space<vmem>>, %arg7: memref<8x128xbf16, #tpu.memory_space<vmem>>) attributes {dimension_semantics = [], scalar_prefetch = 0 : i64, scratch_operands = 0 : i64, tpu.core_type = #tpu.core_type<tc>} {
    %c0 = arith.constant 0 : index
    %c0_0 = arith.constant 0 : index
    %0 = vector.load %arg0[%c0, %c0_0] : memref<8x16xbf16, #tpu.memory_space<vmem>>, vector<8x16xbf16>
    %c0_1 = arith.constant 0 : index
    %c0_2 = arith.constant 0 : index
    %1 = vector.load %arg1[%c0_1, %c0_2] : memref<16x128xbf16, #tpu.memory_space<vmem>>, vector<16x128xbf16>
    %cst = arith.constant dense<0.000000e+00> : vector<8x128xf32>
    %2 = tpu.matmul %0, %1, %cst {dimension_numbers = #tpu.dot_dimension_numbers<[1], [0], [0], [1], [0, 0, 1, 1], [], []>} : vector<8x16xbf16>, vector<16x128xbf16>, vector<8x128xf32> -> vector<8x128xf32>
    %c0_3 = arith.constant 0 : index
    %c0_4 = arith.constant 0 : index
    %3 = vector.load %arg2[%c0_3, %c0_4] : memref<1x128xf32, #tpu.memory_space<vmem>>, vector<1x128xf32>
    %4 = vector.broadcast %3 : vector<1x128xf32> to vector<8x128xf32>
    %5 = arith.addf %2, %4 : vector<8x128xf32>
    %cst_5 = arith.constant 0.000000e+00 : f32
    %6 = vector.broadcast %cst_5 : f32 to vector<8x128xf32>
    %7 = arith.maximumf %5, %6 : vector<8x128xf32>
    %8 = arith.truncf %7 : vector<8x128xf32> to vector<8x128xbf16>
    %c0_6 = arith.constant 0 : index
    %c0_7 = arith.constant 0 : index
    %9 = vector.load %arg3[%c0_6, %c0_7] : memref<128x256xbf16, #tpu.memory_space<vmem>>, vector<128x256xbf16>
    %cst_8 = arith.constant dense<0.000000e+00> : vector<8x256xf32>
    %10 = tpu.matmul %8, %9, %cst_8 {dimension_numbers = #tpu.dot_dimension_numbers<[1], [0], [0], [1], [0, 0, 1, 1], [], []>} : vector<8x128xbf16>, vector<128x256xbf16>, vector<8x256xf32> -> vector<8x256xf32>
    %c0_9 = arith.constant 0 : index
    %c0_10 = arith.constant 0 : index
    %11 = vector.load %arg4[%c0_9, %c0_10] : memref<1x256xf32, #tpu.memory_space<vmem>>, vector<1x256xf32>
    %12 = vector.broadcast %11 : vector<1x256xf32> to vector<8x256xf32>
    %13 = arith.addf %10, %12 : vector<8x256xf32>
    %cst_11 = arith.constant 0.000000e+00 : f32
    %14 = vector.broadcast %cst_11 : f32 to vector<8x256xf32>
    %15 = arith.maximumf %13, %14 : vector<8x256xf32>
    %16 = arith.truncf %15 : vector<8x256xf32> to vector<8x256xbf16>
    %c0_12 = arith.constant 0 : index
    %c0_13 = arith.constant 0 : index
    %17 = vector.load %arg5[%c0_12, %c0_13] : memref<256x128xbf16, #tpu.memory_space<vmem>>, vector<256x128xbf16>
    %cst_14 = arith.constant dense<0.000000e+00> : vector<8x128xf32>
    %18 = tpu.matmul %16, %17, %cst_14 {dimension_numbers = #tpu.dot_dimension_numbers<[1], [0], [0], [1], [0, 0, 1, 1], [], []>} : vector<8x256xbf16>, vector<256x128xbf16>, vector<8x128xf32> -> vector<8x128xf32>
    %c0_15 = arith.constant 0 : index
    %c0_16 = arith.constant 0 : index
    %19 = vector.load %arg6[%c0_15, %c0_16] : memref<1x128xf32, #tpu.memory_space<vmem>>, vector<1x128xf32>
    %20 = vector.broadcast %19 : vector<1x128xf32> to vector<8x128xf32>
    %21 = arith.addf %18, %20 : vector<8x128xf32>
    %cst_17 = arith.constant 0.000000e+00 : f32
    %22 = vector.broadcast %cst_17 : f32 to vector<8x128xf32>
    %23 = arith.maximumf %21, %22 : vector<8x128xf32>
    %24 = tpu.iota {dimensions = array<i32: 1>} : vector<8x128xi32>
    %c64_i32 = arith.constant 64 : i32
    %25 = vector.broadcast %c64_i32 : i32 to vector<8x128xi32>
    %26 = arith.cmpi sge, %24, %25 : vector<8x128xi32>
    %c68_i32 = arith.constant 68 : i32
    %27 = vector.broadcast %c68_i32 : i32 to vector<8x128xi32>
    %28 = arith.cmpi slt, %24, %27 : vector<8x128xi32>
    %29 = arith.andi %26, %28 : vector<8x128xi1>
    %cst_18 = arith.constant 0.000000e+00 : f32
    %30 = vector.broadcast %cst_18 : f32 to vector<8x128xf32>
    %31 = arith.select %29, %23, %30 : vector<8x128xi1>, vector<8x128xf32>
    %cst_19 = arith.constant dense<0.000000e+00> : vector<8xf32>
    %32 = vector.multi_reduction <add>, %31, %cst_19 [1] : vector<8x128xf32> to vector<8xf32>
    %33 = vector.shape_cast %32 : vector<8xf32> to vector<8x1xf32>
    %cst_20 = arith.constant 2.500000e-01 : f32
    %34 = vector.broadcast %cst_20 : f32 to vector<8x1xf32>
    %35 = arith.mulf %33, %34 : vector<8x1xf32>
    %c64_i32_21 = arith.constant 64 : i32
    %36 = tpu.dynamic_rotate %23 by %c64_i32_21 dim 1 : vector<8x128xf32>, i32 -> vector<8x128xf32>
    %37 = arith.addf %23, %36 : vector<8x128xf32>
    %38 = vector.broadcast %35 : vector<8x1xf32> to vector<8x128xf32>
    %39 = arith.subf %37, %38 : vector<8x128xf32>
    %cst_22 = arith.constant 0.000000e+00 : f32
    %40 = vector.broadcast %cst_22 : f32 to vector<8x128xf32>
    %41 = arith.maximumf %39, %40 : vector<8x128xf32>
    %42 = arith.truncf %41 : vector<8x128xf32> to vector<8x128xbf16>
    %c0_23 = arith.constant 0 : index
    %c0_24 = arith.constant 0 : index
    %43 = vector.load %arg7[%c0_23, %c0_24] : memref<8x128xbf16, #tpu.memory_space<vmem>>, vector<8x128xbf16>
    tpu.vector_store %arg7[%c0_23, %c0_24], %42 {strides = array<i32>} : memref<8x128xbf16, #tpu.memory_space<vmem>>, vector<8x128xbf16>,
    return
  }
}

</mosaic_0001>

<bundles_post_ra>
// kernel: dddqn_forward_batch.1
= control target key start
LH: loop header
LB: loop body
LE: loop exit
PB: predicated region body
PF: predicated region fallthrough
CT: control target
= control target key end

     0   :  { %12 = vsyncpa [#allocation3], 0  ;;  %s743_s0 = inlined_call_operand.vmem [shape: bf16[8,16], index: 0, kind: input, shape index: {}]   ;;  %s744_s1 = inlined_call_operand.vmem [shape: bf16[16,128], index: 1, kind: input, shape index: {}]   ;;  %s745_s2 = inlined_call_operand.hbm [shape: f32[1,128], index: 2, kind: input, shape index: {}]   ;;  %s746_s3 = inlined_call_operand.hbm [shape: bf16[128,256], index: 3, kind: input, shape index: {}]   ;;  %s747_s4 = inlined_call_operand.vmem [shape: f32[1,256], index: 4, kind: input, shape index: {}]   ;;  %s748_s5 = inlined_call_operand.hbm [shape: bf16[256,128], index: 5, kind: input, shape index: {}]   ;;  %s749_s6 = inlined_call_operand.vmem [shape: f32[1,128], index: 6, kind: input, shape index: {}]   ;;  %s750_s7 = inlined_call_operand.vmem [shape: bf16[8,128], index: 7, kind: output, shape index: {}]  }
   0x1   :  { %13 = vsyncpa [#allocation5], 0  ;;  %s33_s26 = sshll.u32 %s746_s3, 4  ;;  %s668_s27 = smov [#allocation4]   ;;  %s34_s26 = int_to_ptr.hbm [resolvable:$true] %s33_s26 }
   0x2   :  { %s35_s28 = sshll.u32 %s668_s27, 4  ;;  %s23_s8 = sshll.u32 %s745_s2, 4  ;;  %s36_s28 = int_to_ptr.vmem [resolvable:$true] %s35_s28  ;;  %s24_s8 = int_to_ptr.hbm [resolvable:$true] %s23_s8 }
   0x3   :  { %s669_s9 = smov 128   ;;  %s670_s10 = smov 8  }
   0x4   :  { %41 = dma.hbm_to_vmem [thread:$0]  %s34_s26, 2048, %s36_s28, [#allocation5], %s669_s9, %s669_s9, %s670_s10  }
   0x5   :  { %s671_s11 = smov [#allocation2]   ;;  %s48_s15 = sshll.u32 %s748_s5, 4  ;;  %s49_s15 = int_to_ptr.hbm [resolvable:$true] %s48_s15 }
   0x6   :  { %s25_s12 = sshll.u32 %s671_s11, 4  ;;  %s672_s3 = smov [#allocation6]   ;;  %s26_s12 = int_to_ptr.vmem [resolvable:$true] %s25_s12 }
   0x7   :  { %28 = dma.hbm_to_vmem [thread:$0]  %s24_s8, 16, %s26_s12, [#allocation3]  }
   0x8   :  { %s50_s16 = sshll.u32 %s672_s3, 4  ;;  %s673_s17 = smov 64   ;;  %s51_s16 = int_to_ptr.vmem [resolvable:$true] %s50_s16 }
   0x9   :  { %s674_s18 = smov 4  }
   0xa   :  { %56 = dma.hbm_to_vmem [thread:$0]  %s49_s15, 2048, %s51_s16, [#allocation5], %s673_s17, %s673_s17, %s674_s18  }
   0xb   :  { %664 = dma.done.wait [#allocation3], 16  }
   0xc   :  { %665 = vsyncadd [#allocation3], 4294967280 }
   0xd   :  { %666 = dma.done.wait [#allocation5], 4096  }
   0xe   :  { %667 = vsyncadd [#allocation5], 4294963200  ;;  %v550_v0 = vld [vmem:[%s744_s1] sm:$0xff]  ;;  %vm85_vm0 = vcmask 130048   ;;  %v480_v2 = vld [vmem:[#allocation4 + $0x70] sm:$0xf] }
   0xf   :  { %v72_v1 = vld [vmem:[%s743_s0] sm:$0xf]  ;;  %v566_v3 = vld [vmem:[#allocation4 + $0x74] sm:$0xf0]  ;;  %v565_v4 = vld [vmem:[#allocation4 + $0x74] sm:$0xf]  ;;  %96 = vmatpush.bf16.msra.mxu0 %v550_v0 }
  0x10   :  { %v482_v5 = vld [vmem:[#allocation4 + $0x78] sm:$0xf0]  ;;  %v481_v6 = vor.u32 %v566_v3, %v480_v2  ;;  %v472_v8 = vld [vmem:[#allocation4 + $0x60] sm:$0xf]  ;;  %v564_v9 = vld [vmem:[#allocation4 + $0x64] sm:$0xf0] }
  0x11   :  { %v485_v7 = vor.u32 %v565_v4, %v482_v5  ;;  %v563_v10 = vld [vmem:[#allocation4 + $0x64] sm:$0xf]  ;;  %v474_v11 = vld [vmem:[#allocation4 + $0x68] sm:$0xf0]  ;;  %v473_v12 = vor.u32 %v564_v9, %v472_v8  ;;  %v464_v14 = vld [vmem:[#allocation4 + $0x50] sm:$0xf] }
  0x12   :  { %206 = vmatpush.bf16.msra.mxu1 %v481_v6  ;;  %v477_v13 = vor.u32 %v563_v10, %v474_v11  ;;  %421 = vmatmul.msk.bf16.vlgmr.msra.gmra.mxu0 %vm85_vm0, %v72_v1  ;;  %v562_v15 = vld [vmem:[#allocation4 + $0x54] sm:$0xf0]  ;;  %v561_v16 = vld [vmem:[#allocation4 + $0x54] sm:$0xf]  ;;  %v466_v17 = vld [vmem:[#allocation4 + $0x58] sm:$0xf0] }
  0x13   :  { %219 = vmatpush.bf16.msra.mxu2 %v485_v7  ;;  %v465_v18 = vor.u32 %v562_v15, %v464_v14  ;;  %v469_v19 = vor.u32 %v561_v16, %v466_v17  ;;  %v456_v20 = vld [vmem:[#allocation4 + $0x40] sm:$0xf]  ;;  %v560_v21 = vld [vmem:[#allocation4 + $0x44] sm:$0xf0]  ;;  %v559_v22 = vld [vmem:[#allocation4 + $0x44] sm:$0xf] }
  0x14   :  { %v458_v23 = vld [vmem:[#allocation4 + $0x48] sm:$0xf0]  ;;  %v457_v24 = vor.u32 %v560_v21, %v456_v20  ;;  %v448_v26 = vld [vmem:[#allocation4 + $0x30] sm:$0xf]  ;;  %v558_v27 = vld [vmem:[#allocation4 + $0x34] sm:$0xf0]  ;;  %v395_v21 = vlaneseq }
  0x15   :  { %v461_v25 = vor.u32 %v559_v22, %v458_v23  ;;  %v557_v28 = vld [vmem:[#allocation4 + $0x34] sm:$0xf]  ;;  %v450_v29 = vld [vmem:[#allocation4 + $0x38] sm:$0xf0]  ;;  %v449_v30 = vor.u32 %v558_v27, %v448_v26  ;;  %v440_v32 = vld [vmem:[#allocation4 + $0x20] sm:$0xf] }
  0x16   :  { %207 = vmatpush.bf16.msra.mxu1 %v473_v12  ;;  %v453_v31 = vor.u32 %v557_v28, %v450_v29  ;;  %v556_v33 = vld [vmem:[#allocation4 + $0x24] sm:$0xf0]  ;;  %v555_v34 = vld [vmem:[#allocation4 + $0x24] sm:$0xf]  ;;  %v442_v35 = vld [vmem:[#allocation4 + $0x28] sm:$0xf0] }
  0x17   :  { %220 = vmatpush.bf16.msra.mxu2 %v477_v13  ;;  %v441_v36 = vor.u32 %v556_v33, %v440_v32  ;;  %v445_v37 = vor.u32 %v555_v34, %v442_v35  ;;  %v432_v38 = vld [vmem:[#allocation4 + $0x10] sm:$0xf]  ;;  %v554_v39 = vld [vmem:[#allocation4 + $0x14] sm:$0xf0]  ;;  %v553_v40 = vld [vmem:[#allocation4 + $0x14] sm:$0xf] }
  0x18   :  { %v433_v41 = vor.u32 %v554_v39, %v432_v38  ;;  %v434_v42 = vld [vmem:[#allocation4 + $0x18] sm:$0xf0]  ;;  %v424_v44 = vld [vmem:[#allocation4] sm:$0xf]  ;;  %v552_v45 = vld [vmem:[#allocation4 + $0x4] sm:$0xf0] }
  0x19   :  { %v437_v43 = vor.u32 %v553_v40, %v434_v42  ;;  %v551_v46 = vld [vmem:[#allocation4 + $0x4] sm:$0xf]  ;;  %v425_v47 = vor.u32 %v552_v45, %v424_v44  ;;  %v426_v48 = vld [vmem:[#allocation4 + $0x8] sm:$0xf0]  ;;  %v574_v50 = vld [vmem:[#allocation6 + $0x38] sm:$0xff]  ;;  %v396_v23 = vand.u32 127, %v395_v21 }
  0x1a   :  { %208 = vmatpush.bf16.msra.mxu1 %v465_v18  ;;  %v429_v49 = vor.u32 %v551_v46, %v426_v48  ;;  %v582_v51 = vld [vmem:[#allocation6 + $0x78] sm:$0xff]  ;;  %368 = vmatpush.bf16.msra.mxu3 %v574_v50  ;;  %v573_v52 = vld [vmem:[#allocation6 + $0x30] sm:$0xff]  ;;  %v572_v54 = vld [vmem:[#allocation6 + $0x28] sm:$0xff] }
  0x1b   :  { %221 = vmatpush.bf16.msra.mxu2 %v469_v19  ;;  %381 = vmatpush.bf16.msrb.mxu0 %v582_v51  ;;  %v581_v53 = vld [vmem:[#allocation6 + $0x70] sm:$0xff]  ;;  %v580_v55 = vld [vmem:[#allocation6 + $0x68] sm:$0xff]  ;;  %v571_v56 = vld [vmem:[#allocation6 + $0x20] sm:$0xff]  ;;  %vm397_vm1 = vcmp.ge.s32.totalorder %v396_v23, 64  ;;  %vm398_vm2 = vcmp.lt.s32.totalorder %v396_v23, 68 }
  0x1c   :  { %v579_v57 = vld [vmem:[#allocation6 + $0x60] sm:$0xff]  ;;  %v570_v58 = vld [vmem:[#allocation6 + $0x18] sm:$0xff]  ;;  %v569_v60 = vld [vmem:[#allocation6 + $0x10] sm:$0xff] }
  0x1d   :  { %v578_v59 = vld [vmem:[#allocation6 + $0x58] sm:$0xff]  ;;  %v568_v3 = vld [vmem:[#allocation6 + $0x8] sm:$0xff]  ;;  %v577_v4 = vld [vmem:[#allocation6 + $0x50] sm:$0xff] }
  0x1e   :  { %209 = vmatpush.bf16.msra.mxu1 %v457_v24  ;;  %369 = vmatpush.bf16.msra.mxu3 %v573_v52  ;;  %v590_v61 = vld [vmem:[#allocation2] ss:$0 sm:$0xff]  ;;  %v567_v5 = vld [vmem:[#allocation6] sm:$0xff]  ;;  %v576_v6 = vld [vmem:[#allocation6 + $0x48] sm:$0xff] }
  0x1f   :  { %222 = vmatpush.bf16.msra.mxu2 %v461_v25  ;;  %382 = vmatpush.bf16.msrb.mxu0 %v581_v53  ;;  %v575_v7 = vld [vmem:[#allocation6 + $0x40] sm:$0xff]  ;;  %v120_v8 = vld [vmem:[%s747_s4] sm:$0x3]  ;;  %vm399_vm3 = vmand %vm397_vm1, %vm398_vm2 }
  0x20   :  { %v122_v9 = vperm.slane %v120_v8, 0  ;;  %v123_v13 = vperm.slane %v120_v8, 1  ;;  %v591_v22 = vld [vmem:[%s749_s6] ss:$0 sm:$0xff] }
  0x22   :  { %210 = vmatpush.bf16.msra.mxu1 %v449_v30  ;;  %370 = vmatpush.bf16.msra.mxu3 %v572_v54 }
  0x23   :  { %223 = vmatpush.bf16.msra.mxu2 %v453_v31  ;;  %383 = vmatpush.bf16.msrb.mxu0 %v580_v55 }
  0x26   :  { %211 = vmatpush.bf16.msra.mxu1 %v441_v36  ;;  %371 = vmatpush.bf16.msra.mxu3 %v571_v56 }
  0x27   :  { %224 = vmatpush.bf16.msra.mxu2 %v445_v37  ;;  %384 = vmatpush.bf16.msrb.mxu0 %v579_v57 }
  0x2a   :  { %212 = vmatpush.bf16.msra.mxu1 %v433_v41  ;;  %372 = vmatpush.bf16.msra.mxu3 %v570_v58 }
  0x2b   :  { %225 = vmatpush.bf16.msra.mxu2 %v437_v43  ;;  %385 = vmatpush.bf16.msrb.mxu0 %v578_v59 }
  0x2e   :  { %213 = vmatpush.bf16.msra.mxu1 %v425_v47  ;;  %373 = vmatpush.bf16.msra.mxu3 %v569_v60 }
  0x2f   :  { %226 = vmatpush.bf16.msra.mxu2 %v429_v49  ;;  %386 = vmatpush.bf16.msrb.mxu0 %v577_v4 }
  0x32   :  { %374 = vmatpush.bf16.msra.mxu3 %v568_v3 }
  0x33   :  { %387 = vmatpush.bf16.msrb.mxu0 %v576_v6 }
  0x36   :  { %375 = vmatpush.bf16.msra.mxu3 %v567_v5 }
  0x37   :  { %388 = vmatpush.bf16.msrb.mxu0 %v575_v7 }
  0x8f   :  { %v98_v62 = vpop.f32.mrf.mxu0 }
  0x90   :  { %v99_v63 = vadd.f32 %v590_v61, %v98_v62 }
  0x92   :  { %v102_v0 = vmax.f32 %v99_v63, 0.0 }
  0x94   :  { %v103_v1 = vpack.c.bf16 %v102_v0, %v102_v0 }
  0x96   :  { %214 = vmatmul.bf16.vlgmr.msra.gmra.mxu1 %v103_v1  ;;  %227 = vmatmul.bf16.vlgmr.msra.gmra.mxu2 %v103_v1 }
  0x97   :  { %v100_v2 = vpop.f32.mrf.mxu0 }
 0x113   :  { %v215_v10 = vpop.f32.mrf.mxu1 }
 0x114   :  { %v216_v11 = vadd.f32 %v215_v10, %v122_v9 }
 0x116   :  { %v232_v12 = vmax.f32 %v216_v11, 0.0 }
 0x118   :  { %v234_v14 = vpack.c.bf16 %v232_v12, %v232_v12 }
 0x119   :  { %v228_v15 = vpop.f32.mrf.mxu2 }
 0x11a   :  { %v229_v16 = vadd.f32 %v228_v15, %v123_v13  ;;  %376 = vmatmul.bf16.vlgmr.msra.gmra.mxu3 %v234_v14 }
 0x11b   :  { %v217_v17 = vpop.f32.mrf.mxu1 }
 0x11c   :  { %v233_v18 = vmax.f32 %v229_v16, 0.0 }
 0x11e   :  { %v235_v19 = vpack.c.bf16 %v233_v18, %v233_v18 }
 0x120   :  { %389 = vmatmul.bf16.vlgmr.msrb.gmra.mxu0 %v235_v19 }
 0x121   :  { %v230_v20 = vpop.f32.mrf.mxu2 }
 0x19d   :  { %v377_v24 = vpop.f32.mrf.mxu3  ;;  %v390_v25 = vpop.f32.mrf.mxu0 }
 0x19e   :  { %v378_v26 = vadd.f32 %v591_v22, %v377_v24 }
 0x1a0   :  { %v391_v27 = vadd.f32 %v390_v25, %v378_v26 }
 0x1a2   :  { %v394_v28 = vmax.f32 %v391_v27, 0.0 }
 0x1a4   :  { %v400_v29 = vsel %vm399_vm3, %v394_v28, 0.0 }
 0x1a5   :  { %v379_v30 = vpop.f32.mrf.mxu3  ;;  %v392_v31 = vpop.f32.mrf.mxu0  ;;  %401 = vadd.xlane.f32.xlu0 %v400_v29 }
 0x1b9   :  { %404 = vrot.lane.b32.xlu0 %v394_v28, %s673_s17 }
 0x218   :  { %v402_v32 = vpop.xlane.xlu0 %401 }
 0x219   :  { %v403_v34 = vmul.f32 0.25, %v402_v32 }
 0x22b   :  { %v405_v33 = vpop.permute.xlu0 %404 }
 0x22c   :  { %v406_v35 = vadd.f32 %v405_v33, %v394_v28 }
 0x22e   :  { %v407_v36 = vsub.f32 %v406_v35, %v403_v34 }
 0x230   :  { %v408_v37 = vmax.f32 %v407_v36, 0.0 }
 0x232   :  { %v409_v38 = vpack.c.bf16 %v408_v37, %v408_v37 }
 0x234   :  { %410 = vst [vmem:[%s750_s7] sm:$0xf] %v409_v38 }
 0x235   :  { %415 = vsyncpa [#allocation3], 1 }
 0x236   :  { %416 = vsyncpa [#allocation5], 1 }

</bundles_post_ra>
